<compile_context>
chip_gen: v7x
topology: tpu7x:2x2x1
jax: 0.10.0
libtpu: 0.0.40
codegen_flags: <defaults>
</compile_context>

<pallas_src>
import functools
import math

import jax
import jax.numpy as jnp
from jax.experimental import pallas as pl
from jax.experimental.pallas import tpu as pltpu


def _round_up(x, m):
    return (x + m - 1) // m * m


# ---------------------------------------------------------------------------
# Fast path: whole (N, dim) slab resident in VMEM, one grid step per sample.
# ---------------------------------------------------------------------------
def _single_tile_kernel(h_ref, a_ref, bt_ref, o_ref):
    h = h_ref[...]                                   # (N, dim) f32, full N
    # t = tanh(h @ a): MXU matmul with f32 accumulation, tanh on the EUP.
    t = jnp.tanh(jnp.dot(h, a_ref[...], preferred_element_type=jnp.float32))
    # e = t @ b as VPU multiply + lane reduce (b transposed to (1, da)).
    e = jnp.sum(t * bt_ref[...], axis=-1, keepdims=True)        # (N, 1)
    e_row = e.T                                                  # (1, N) lane-dense
    m = jnp.max(e_row, axis=-1, keepdims=True)
    p = jnp.exp(e_row - m)
    l = jnp.sum(p, axis=-1, keepdims=True)
    # Weighted sum as an MXU contraction over N; exact normalization.
    o_ref[...] = jnp.dot(p, h, preferred_element_type=jnp.float32) / l


# ---------------------------------------------------------------------------
# Streaming path: flash-style online softmax over N tiles.
# ---------------------------------------------------------------------------
def _online_kernel(nvalid_ref, h_ref, a_ref, bt_ref, o_ref, m_ref, l_ref, *,
                   tile_n):
    n_idx = pl.program_id(1)
    n_valid = nvalid_ref[0]                          # SMEM scalar (true N)

    @pl.when(n_idx == 0)
    def _init():
        m_ref[...] = jnp.full_like(m_ref, -jnp.inf)
        l_ref[...] = jnp.zeros_like(l_ref)
        o_ref[...] = jnp.zeros_like(o_ref)

    row0 = n_idx * tile_n

    # Zero garbage rows of the (possibly partial) last tile.  p == 0 alone is
    # not enough protection for the final MXU contraction (0 * NaN = NaN).
    row = row0 + jax.lax.broadcasted_iota(jnp.int32, (tile_n, 1), 0)
    h = jnp.where(row < n_valid, h_ref[...], 0.0)                # (tile_n, dim)

    t = jnp.tanh(jnp.dot(h, a_ref[...], preferred_element_type=jnp.float32))
    e = jnp.sum(t * bt_ref[...], axis=-1, keepdims=True)         # (tile_n, 1)
    e_row = e.T                                                   # (1, tile_n)

    # Lane-dense mask: keep padded rows out of the softmax.
    col = row0 + jax.lax.broadcasted_iota(jnp.int32, (1, tile_n), 1)
    e_row = jnp.where(col < n_valid, e_row, -1e30)

    m_prev = m_ref[...]                                           # (1, 1)
    m_new = jnp.maximum(m_prev, jnp.max(e_row, axis=-1, keepdims=True))
    alpha = jnp.exp(m_prev - m_new)
    p = jnp.exp(e_row - m_new)                                    # (1, tile_n)

    l_ref[...] = alpha * l_ref[...] + jnp.sum(p, axis=-1, keepdims=True)
    o_ref[...] = alpha * o_ref[...] + jnp.dot(
        p, h, preferred_element_type=jnp.float32)
    m_ref[...] = m_new

    @pl.when(n_idx == pl.num_programs(1) - 1)
    def _finalize():
        o_ref[...] = o_ref[...] / l_ref[...]         # exact; runs once/sample


def self_attention_layer(h, a, b, *, tile_n=2048,
                         vmem_budget_bytes=4 * 1024 * 1024):
    """KBRD SelfAttentionLayer.forward.

    h: [N, dim] or [B, N, dim] float32; a: [dim, da]; b: [da, 1].
    Returns [dim] (or [B, dim] for batched input).
    """
    squeeze = (h.ndim == 2)
    if squeeze:
        h = h[None]
    h = h.astype(jnp.float32)
    a = a.astype(jnp.float32)
    b = b.astype(jnp.float32)

    B, N, dim = h.shape
    da = a.shape[1]
    bt = b.reshape(1, da)                            # b transposed: (1, da)

    # --- single-tile fast path (typical KBRD sizes) ------------------------
    if N * dim * 4 <= vmem_budget_bytes:
        out = pl.pallas_call(
            _single_tile_kernel,
            out_shape=jax.ShapeDtypeStruct((B, 1, dim), jnp.float32),
            grid=(B,),
            in_specs=[
                pl.BlockSpec((None, N, dim), lambda bi: (bi, 0, 0)),
                pl.BlockSpec((dim, da), lambda bi: (0, 0)),
                pl.BlockSpec((1, da), lambda bi: (0, 0)),
            ],
            out_specs=pl.BlockSpec((None, 1, dim), lambda bi: (bi, 0, 0)),
            compiler_params=pltpu.CompilerParams(
                dimension_semantics=("parallel",)),
        )(h, a, bt)
        out = out[:, 0, :]
        return out[0] if squeeze else out

    # --- streaming path: online softmax over N tiles ------------------------
    # Per-buffer budget keeps 2x double-buffered h tile inside the scoped-VMEM
    # default on every generation (v5e 16 MiB, v6e/v7x 32 MiB scoped).
    max_rows = max(8, vmem_budget_bytes // (dim * 4) // 8 * 8)
    tile = min(_round_up(tile_n, 8), max_rows, _round_up(N, 8))
    n_tiles = pl.cdiv(N, tile)
    n_valid = jnp.array([N], dtype=jnp.int32)        # SMEM scalar prefetch

    kernel = functools.partial(_online_kernel, tile_n=tile)

    out = pl.pallas_call(
        kernel,
        out_shape=jax.ShapeDtypeStruct((B, 1, dim), jnp.float32),
        grid_spec=pltpu.PrefetchScalarGridSpec(
            num_scalar_prefetch=1,
            grid=(B, n_tiles),
            in_specs=[
                pl.BlockSpec((None, tile, dim), lambda bi, ni, nv: (bi, ni, 0)),
                pl.BlockSpec((dim, da), lambda bi, ni, nv: (0, 0)),
                pl.BlockSpec((1, da), lambda bi, ni, nv: (0, 0)),
            ],
            out_specs=pl.BlockSpec((None, 1, dim),
                                   lambda bi, ni, nv: (bi, 0, 0)),
            scratch_shapes=[
                pltpu.VMEM((1, 1), jnp.float32),     # running max  m
                pltpu.VMEM((1, 1), jnp.float32),     # running denom l
            ]),
        compiler_params=pltpu.CompilerParams(
            dimension_semantics=("parallel", "arbitrary")),
    )(n_valid, h, a, bt)

    out = out[:, 0, :]
    return out[0] if squeeze else out


def xavier_uniform(key, shape, gain=1.414):
    """Matches nn.init.xavier_uniform_ for a 2-D parameter."""
    fan_in, fan_out = shape[0], shape[1]
    bound = gain * math.sqrt(6.0 / (fan_in + fan_out))
    return jax.random.uniform(key, shape, jnp.float32, minval=-bound, maxval=bound)


def _reference(h, a, b):
    e = jnp.matmul(jnp.tanh(jnp.matmul(h, a)), b)[..., 0]        # (..., N)
    attn = jax.nn.softmax(e, axis=-1)
    if h.ndim == 2:
        return jnp.matmul(attn, h)
    return jnp.einsum("bn,bnd->bd", attn, h)


if __name__ == "__main__":
    key = jax.random.PRNGKey(0)
    k_h, k_a, k_b, k_hb, k_hc = jax.random.split(key, 5)

    # 1) Single-sample forward at typical module shapes -> fast path.
    N, DIM, DA = 8, 32, 16
    h = jax.random.normal(k_h, (N, DIM), dtype=jnp.float32)
    a = xavier_uniform(k_a, (DIM, DA), gain=1.414)
    b = xavier_uniform(k_b, (DA, 1), gain=1.414)

    out = self_attention_layer(h, a, b)
    jax.block_until_ready(out)
    out_ref = _reference(h, a, b)
    assert out.shape == (DIM,)
    assert jnp.allclose(out, out_ref, atol=2e-3, rtol=2e-3)

    # 2) Batched input, N not a multiple of the tile -> streaming path with a
    #    partial last tile (tiny VMEM budget forces the multi-tile path).
    B2, N2 = 2, 20
    hb = jax.random.normal(k_hb, (B2, N2, DIM), dtype=jnp.float32)
    out_b = self_attention_layer(hb, a, b, tile_n=8, vmem_budget_bytes=512)
    jax.block_until_ready(out_b)
    out_b_ref = _reference(hb, a, b)
    assert out_b.shape == (B2, DIM)
    assert jnp.allclose(out_b, out_b_ref, atol=2e-3, rtol=2e-3)

    # 3) Streaming path with N an exact multiple of the tile (no partial tile).
    N3 = 24
    hc = jax.random.normal(k_hc, (N3, DIM), dtype=jnp.float32)
    out_c = self_attention_layer(hc, a, b, tile_n=8, vmem_budget_bytes=512)
    jax.block_until_ready(out_c)
    out_c_ref = _reference(hc, a, b)
    assert out_c.shape == (DIM,)
    assert jnp.allclose(out_c, out_c_ref, atol=2e-3, rtol=2e-3)

    print("KERNEL_OK")
</pallas_src>

<mosaic_0001>
module attributes {stable_mosaic.version = 11 : i64} {
  func.func @_single_tile_kernel(%arg0: i32, %arg1: memref<1x8x32xf32, #tpu.memory_space<vmem>>, %arg2: memref<32x16xf32, #tpu.memory_space<vmem>>, %arg3: memref<1x16xf32, #tpu.memory_space<vmem>>, %arg4: memref<1x1x32xf32, #tpu.memory_space<vmem>>) attributes {dimension_semantics = [#tpu.dimension_semantics<parallel>], iteration_bounds = array<i64: 1>, scalar_prefetch = 0 : i64, scratch_operands = 0 : i64, tpu.core_type = #tpu.core_type<tc>, window_params = [{transform_indices = @transform_0, window_bounds = array<i64: 1, 8, 32>}, {pipeline_mode = #tpu.pipeline_mode<synchronous>, transform_indices = @transform_1, window_bounds = array<i64: 32, 16>}, {pipeline_mode = #tpu.pipeline_mode<synchronous>, transform_indices = @transform_2, window_bounds = array<i64: 1, 16>}, {transform_indices = @transform_3, window_bounds = array<i64: 1, 1, 32>}]} {
    %c0 = arith.constant 0 : index
    %c0_0 = arith.constant 0 : index
    %c0_1 = arith.constant 0 : index
    %0 = vector.load %arg1[%c0, %c0_0, %c0_1] : memref<1x8x32xf32, #tpu.memory_space<vmem>>, vector<1x8x32xf32>
    %1 = vector.shape_cast %0 : vector<1x8x32xf32> to vector<8x32xf32>
    %c0_2 = arith.constant 0 : index
    %c0_3 = arith.constant 0 : index
    %2 = vector.load %arg2[%c0_2, %c0_3] : memref<32x16xf32, #tpu.memory_space<vmem>>, vector<32x16xf32>
    %cst = arith.constant dense<0.000000e+00> : vector<8x16xf32>
    %3 = tpu.matmul %1, %2, %cst {dimension_numbers = #tpu.dot_dimension_numbers<[1], [0], [0], [1], [0, 0, 1, 1], [], []>} : vector<8x32xf32>, vector<32x16xf32>, vector<8x16xf32> -> vector<8x16xf32>
    %4 = math.tanh %3 : vector<8x16xf32>
    %c0_4 = arith.constant 0 : index
    %c0_5 = arith.constant 0 : index
    %5 = vector.load %arg3[%c0_4, %c0_5] : memref<1x16xf32, #tpu.memory_space<vmem>>, vector<1x16xf32>
    %6 = vector.broadcast %5 : vector<1x16xf32> to vector<8x16xf32>
    %7 = arith.mulf %4, %6 : vector<8x16xf32>
    %cst_6 = arith.constant dense<0.000000e+00> : vector<8xf32>
    %8 = vector.multi_reduction <add>, %7, %cst_6 [1] : vector<8x16xf32> to vector<8xf32>
    %9 = vector.shape_cast %8 : vector<8xf32> to vector<8x1xf32>
    %10 = tpu.transpose %9, [1, 0] : vector<8x1xf32> -> vector<1x8xf32>
    %cst_7 = arith.constant dense<0xFF800000> : vector<1xf32>
    %11 = vector.multi_reduction <maximumf>, %10, %cst_7 [1] : vector<1x8xf32> to vector<1xf32>
    %12 = vector.shape_cast %11 : vector<1xf32> to vector<1x1xf32>
    %13 = vector.broadcast %12 : vector<1x1xf32> to vector<1x8xf32>
    %14 = arith.subf %10, %13 : vector<1x8xf32>
    %15 = math.exp %14 : vector<1x8xf32>
    %cst_8 = arith.constant dense<0.000000e+00> : vector<1xf32>
    %16 = vector.multi_reduction <add>, %15, %cst_8 [1] : vector<1x8xf32> to vector<1xf32>
    %17 = vector.shape_cast %16 : vector<1xf32> to vector<1x1xf32>
    %cst_9 = arith.constant dense<0.000000e+00> : vector<1x32xf32>
    %18 = tpu.matmul %15, %1, %cst_9 {dimension_numbers = #tpu.dot_dimension_numbers<[1], [0], [0], [1], [0, 0, 1, 1], [], []>} : vector<1x8xf32>, vector<8x32xf32>, vector<1x32xf32> -> vector<1x32xf32>
    %19 = vector.broadcast %17 : vector<1x1xf32> to vector<1x32xf32>
    %20 = arith.divf %18, %19 : vector<1x32xf32>
    %c0_10 = arith.constant 0 : index
    %c0_11 = arith.constant 0 : index
    %c0_12 = arith.constant 0 : index
    %21 = vector.load %arg4[%c0_10, %c0_11, %c0_12] : memref<1x1x32xf32, #tpu.memory_space<vmem>>, vector<1x1x32xf32>
    %22 = vector.shape_cast %21 : vector<1x1x32xf32> to vector<1x32xf32>
    %23 = vector.shape_cast %20 : vector<1x32xf32> to vector<1x1x32xf32>
    tpu.vector_store %arg4[%c0_10, %c0_11, %c0_12], %23 {strides = array<i32>} : memref<1x1x32xf32, #tpu.memory_space<vmem>>, vector<1x1x32xf32>,
    return
  }
  func.func @transform_0(%arg0: i32) -> (i32, i32, i32) {
    %c0_i32 = arith.constant 0 : i32
    %c0_i32_0 = arith.constant 0 : i32
    %c0_i32_1 = arith.constant 0 : i32
    return %arg0, %c0_i32, %c0_i32_0 : i32, i32, i32
  }
  func.func @transform_1(%arg0: i32) -> (i32, i32) {
    %c0_i32 = arith.constant 0 : i32
    %c0_i32_0 = arith.constant 0 : i32
    %c0_i32_1 = arith.constant 0 : i32
    return %c0_i32, %c0_i32_0 : i32, i32
  }
  func.func @transform_2(%arg0: i32) -> (i32, i32) {
    %c0_i32 = arith.constant 0 : i32
    %c0_i32_0 = arith.constant 0 : i32
    %c0_i32_1 = arith.constant 0 : i32
    return %c0_i32, %c0_i32_0 : i32, i32
  }
  func.func @transform_3(%arg0: i32) -> (i32, i32, i32) {
    %c0_i32 = arith.constant 0 : i32
    %c0_i32_0 = arith.constant 0 : i32
    %c0_i32_1 = arith.constant 0 : i32
    return %arg0, %c0_i32, %c0_i32_0 : i32, i32, i32
  }
}

</mosaic_0001>

<bundles_post_ra>
// kernel: tpu_custom_call.1
= control target key start
LH: loop header
LB: loop body
LE: loop exit
PB: predicated region body
PF: predicated region fallthrough
CT: control target
= control target key end

     0   :  { %v307_v3 = vmov 0.0|0.0   ;;  %vm308_vm0 = vmmov 0   ;;  %v309_v6 = vmov 0.0   ;;  %s361_s0 = inlined_call_operand.vmem [shape: f32[1,8,32], index: 0, kind: input, shape index: {}]   ;;  %s362_s1 = inlined_call_operand.vmem [shape: f32[32,16], index: 1, kind: input, shape index: {}]   ;;  %s363_s2 = inlined_call_operand.vmem [shape: f32[1,16], index: 2, kind: input, shape index: {}]   ;;  %s364_s3 = inlined_call_operand.hbm [shape: f32[1,1,32], index: 3, kind: output, shape index: {}]  }
   0x1   :  { %v16_v0 = vld [vmem:[%s362_s1] sm:$0xff]  ;;  %v17_v1 = vld [vmem:[%s362_s1 + $0x8] sm:$0xff]  ;;  %v18_v2 = vld [vmem:[%s362_s1 + $0x10] sm:$0xff]  ;;  %267 = vmatprep.subr.bf16.mxu0 %v307_v3  ;;  %259 = vmatprep.mubr.msk.f32.mxu0 %vm308_vm0, %v309_v6 }
   0x2   :  { %v268_v4 = vpack.c.bf16 %v17_v1, %v16_v0  ;;  %v19_v5 = vld [vmem:[%s362_s1 + $0x18] sm:$0xff] }
   0x3   :  { %8 = vsyncpa [#allocation3], 0  ;;  %v15_v7 = vld [vmem:[%s361_s0] sm:$0xff]  ;;  %262 = vmatprep.subr.mxu1 %v309_v6  ;;  %264 = vmatprep.mubr.msk.f32.mxu1 %vm308_vm0, %v309_v6  ;;  %v271_v8 = vpack.c.bf16 %v19_v5, %v18_v2  ;;  %vm20_vm1 = vcmask 261120   ;;  %vm103_vm2 = vcmask 130048   ;;  %vm139_vm3 = vcmask 57344  }
   0x4   :  { %269 = vmatpush3.bf16.msra.mxu0 %v268_v4  ;;  %263 = vmatpush3.msra.mxu1 %v15_v7  ;;  %v242_v11 = vld [vmem:[%s363_s2] ss:$0 sm:$0xff]  ;;  %vm149_vm4 = vcmask 64512   ;;  %s310_s0 = smov [#allocation2]   ;;  %vm225_vm5 = vcmask 253952  }
   0x5   :  { %270 = vmatprep.subr.bf16.mxu0 %v307_v3  ;;  %s233_s2 = sshll.u32 %s310_s0, 4  ;;  %s234_s2 = int_to_ptr.vmem [resolvable:$true] %s233_s2 }
   0x6   :  { %s283_s23 = scalar_lea.vmem %s234_s2, 16  ;;  %s287_s24 = scalar_lea.vmem %s234_s2, 32 }
   0x7   :  { %p284_p0 = scmp.ne.s32.totalorder %s234_s2, %s283_s23  ;;  %p288_p1 = scmp.lt.s32.totalorder %s234_s2, %s234_s2 }
   0x8   :  { %272 = vmatpush3.bf16.msra.mxu0 %v271_v8  ;;  %p289_p2 = scmp.lt.s32.totalorder %s287_s24, %s283_s23 }
   0xa   :  { %p290_p3 = por %p289_p2, %p288_p1 }
   0xb   :  { %260 = vmatmul.mubr.msk.f32.vlgmr.msra.gmra.mrb[0].mxu0 %vm20_vm1, %v15_v7 }
   0xc   :  { %p291_p4 = pnand %p290_p3, %p284_p0 }
  0xde   :  { %v90_v9 = vpop.f32.mrb[0].mxu0 }
  0xdf   :  { %277 = vtanh.f32 %v90_v9  ;;  %v261_v10 = vpop.f32.mrb[1].mxu0 }
  0xe9   :  { %v278_v12 = vpop.eup %277 }
  0xea   :  { %v102_v13 = vmul.f32 %v278_v12, %v242_v11 }
  0xec   :  { %v104_v14 = vsel %vm103_vm2, %v102_v13, 0.0 }
  0xed   :  { %105 = vadd.xlane.f32.xlu0 %v104_v14 }
 0x17a   :  { %v106_v15 = vpop.xlane.xlu0 %105 }
 0x17b   :  { %107 = vxpose.xlu0.b32.start.end [1/1] (short) (narrow) %v106_v15, 8 }
 0x1fb   :  { %v123_v16 = vpop.trf.xlu0 }
 0x1fc   :  { %v140_v17 = vsel %vm139_vm3, %v123_v16, -inf }
 0x1fd   :  { %141 = vmax.xlane.f32.xlu1 %v140_v17 }
 0x28a   :  { %v142_v18 = vpop.xlane.xlu1 %141 }
 0x28b   :  { %v143_v19 = vsub.f32 %v123_v16, %v142_v18 }
 0x28d   :  { %v144_v20 = vmul.f32 1.442695, %v143_v19 }
 0x28f   :  { %279 = vpow2.f32 %v144_v20 }
 0x299   :  { %v280_v21 = vpop.eup %279 }
 0x29a   :  { %265 = vmatmul.mubr.msk.f32.vlgmr.msra.gmra.mrb[0].mxu1 %vm149_vm4, %v280_v21  ;;  %v146_v22 = vsel %vm139_vm3, %v280_v21, 0.0 }
 0x29b   :  { %147 = vadd.xlane.f32.xlu1 %v146_v22 }
 0x328   :  { %v148_v23 = vpop.xlane.xlu1 %147 }
 0x329   :  { %281 = vrcp.f32 %v148_v23 }
 0x333   :  { %v282_v24 = vpop.eup %281 }
 0x36d   :  { %v219_v25 = vpop.f32.mrb[0].mxu1 }
 0x36e   :  { %v224_v26 = vmul.f32 %v282_v24, %v219_v25  ;;  %v266_v27 = vpop.f32.mrb[1].mxu1 }
 0x370   :  { %226 = vst.msk [vmem:[#allocation2] sm:$0x1] %vm225_vm5, %v224_v26 }
 0x371   :  { %294 = shalt.err (!%p291_p4)
}
 0x372   :  { %s295_s27 = scalar_lea.hbm %s364_s3, 16 }
 0x373   :  { %p296_p5 = scmp.ne.s32.totalorder %s364_s3, %s295_s27  ;;  %p299_p6 = scmp.lt.u32.totalorder %s295_s27, %s364_s3 }
 0x375   :  { %p301_p7 = pnand %p299_p6, %p296_p5 }
 0x377   :  { %304 = shalt.err (!%p301_p7)
}
 0x378   :  { %236 = dma.vmem_to_hbm [thread:$0]  %s234_s2, 16, %s364_s3, [#allocation3]  }
 0x379   :  { %305 = dma.done.wait [#allocation3], 16  }
 0x37a   :  { %306 = vsyncadd [#allocation3], 4294967280 }
 0x37b   :  { %240 = vsyncpa [#allocation3], 1 }

</bundles_post_ra>
